<compile_context>
chip_gen: v7x
topology: tpu7x:2x2x1
jax: 0.10.0
libtpu: 0.0.40
codegen_flags: <defaults>
</compile_context>

<pallas_src>
import functools

import jax
import jax.numpy as jnp
from jax import lax
from jax.experimental import pallas as pl
from jax.experimental.pallas import tpu as pltpu

# M/N grid axes are parallel (megacore on v7x), K is the reduction axis and
# therefore "arbitrary" (accumulator pattern).  Worst-case double-buffered tile
# footprint with the tile caps below is ~6 MB, comfortably under v7x's 64 MiB
# physical VMEM; 48 MiB scoped limit leaves headroom on every generation.
_COMPILER_PARAMS = pltpu.CompilerParams(
    dimension_semantics=("parallel", "parallel", "arbitrary"),
    vmem_limit_bytes=48 * 1024 * 1024,
)

_MAX_TM = 512
_MAX_TN = 256    # keep <= 256 to limit f32-epilogue vreg pressure; grow K instead
_MAX_TK = 2048


def _rup(x, m):
    return ((x + m - 1) // m) * m


def _pad2d(x, mp, np_):
    m, n = x.shape
    if mp == m and np_ == n:
        return x
    return jnp.pad(x, ((0, mp - m), (0, np_ - n)))


def _largest_tile(dim_padded, unit, cap):
    """Largest multiple of `unit` that divides dim_padded and is <= cap."""
    d = dim_padded // unit
    for c in range(min(d, cap // unit), 0, -1):
        if d % c == 0:
            return c * unit
    return unit


def _tiles_for(m, kp, np_):
    """Tile plan for an (m, kp) x (kp, np_) matmul; kp/np_ already 128-padded."""
    mp = _rup(m, 16)                                 # bf16 min sublane tile = 16
    tm = _largest_tile(mp, 16, _MAX_TM)
    tk = _largest_tile(kp, 128, _MAX_TK)
    tn = _largest_tile(np_, 128, _MAX_TN)
    # v7x has 2 TensorCores: make sure at least one "parallel" grid axis has
    # >= 2 blocks when the problem allows it (harmless on v5e/v6e).
    if mp // tm == 1 and np_ // tn == 1:
        if np_ >= 256:
            tn = 128
        elif tm >= 128 and (tm // 2) % 16 == 0:
            tm //= 2
    return tm, mp, tk, tn


# ------------------------- fused tiled matmul kernel -------------------------

def _mm_fused_kernel(*refs, act, has_residual):
    if has_residual:
        x_ref, w_ref, s_ref, b_ref, r_ref, o_ref, acc_ref = refs
    else:
        x_ref, w_ref, s_ref, b_ref, o_ref, acc_ref = refs
        r_ref = None

    k = pl.program_id(2)

    @pl.when(k == 0)
    def _():
        acc_ref[...] = jnp.zeros_like(acc_ref)

    # bf16 x bf16 on the MXU, f32 accumulation.
    acc_ref[...] += jnp.dot(x_ref[...], w_ref[...],
                            preferred_element_type=jnp.float32)

    @pl.when(k == pl.num_programs(2) - 1)
    def _():
        y = acc_ref[...] * s_ref[...] + b_ref[...]
        if has_residual:
            y = y + r_ref[...].astype(jnp.float32)
        if act == "relu":
            y = jnp.maximum(y, 0.0)
        o_ref[...] = y.astype(o_ref.dtype)


def matmul_fused(x, w_pad, scale_pad, shift_pad, n, act="none", residual=None,
                 out_dtype=jnp.bfloat16):
    """act((x @ w) * scale + shift [+ residual]) — tiled bf16 MXU matmul.

    `w_pad` is a pre-cast bf16 (kp, np_) weight (kp, np_ padded to 128);
    `scale_pad` / `shift_pad` are pre-padded f32 (1, np_) rows.  Only the
    activation `x` (and optional residual) is cast/padded here.
    """
    m, k = x.shape
    kp, np_ = w_pad.shape
    assert kp >= k and kp % 128 == 0 and np_ % 128 == 0

    tm, mp, tk, tn = _tiles_for(m, kp, np_)

    xp = _pad2d(x.astype(jnp.bfloat16), mp, kp)

    in_specs = [
        pl.BlockSpec((tm, tk), lambda i, j, kk: (i, kk)),
        pl.BlockSpec((tk, tn), lambda i, j, kk: (kk, j)),   # independent of M axis
        pl.BlockSpec((1, tn), lambda i, j, kk: (0, j)),
        pl.BlockSpec((1, tn), lambda i, j, kk: (0, j)),
    ]
    args = [xp, w_pad, scale_pad, shift_pad]

    has_residual = residual is not None
    if has_residual:
        args.append(_pad2d(residual.astype(jnp.bfloat16), mp, np_))
        in_specs.append(pl.BlockSpec((tm, tn), lambda i, j, kk: (i, j)))

    out = pl.pallas_call(
        functools.partial(_mm_fused_kernel, act=act, has_residual=has_residual),
        out_shape=jax.ShapeDtypeStruct((mp, np_), out_dtype),
        grid=(mp // tm, np_ // tn, kp // tk),
        in_specs=in_specs,
        out_specs=pl.BlockSpec((tm, tn), lambda i, j, kk: (i, j)),
        scratch_shapes=[pltpu.VMEM((tm, tn), jnp.float32)],
        compiler_params=_COMPILER_PARAMS,
    )(*args)
    if (mp, np_) != (m, n):
        out = out[:m, :n]
    return out


# ------------------------- conv / pool glue -------------------------

def conv_bn_act(x, layer, stride, pad, act, residual=None):
    """Conv (no bias) + inference BN (scale/shift) + [residual add] + activation."""
    nb, h, w_, cin = x.shape
    kh, kw = layer["kh"], layer["kw"]
    cout = layer["n"]
    ho = (h + 2 * pad - kh) // stride + 1
    wo = (w_ + 2 * pad - kw) // stride + 1

    if kh == 1 and kw == 1 and pad == 0:
        # 1x1 conv: pure (strided) reshape, no im2col blowup.
        xs = x[:, ::stride, ::stride, :] if stride != 1 else x
        patches = xs.reshape(nb * ho * wo, cin)
    else:
        # TODO(synk): im2col patches still materialized by XLA in HBM (bf16);
        # a fully in-kernel tap-loop gather would need manual DMA windows.
        xp = jnp.pad(x, ((0, 0), (pad, pad), (pad, pad), (0, 0)))
        cols = [xp[:, i:i + stride * ho:stride, j:j + stride * wo:stride, :]
                for i in range(kh) for j in range(kw)]
        patches = jnp.concatenate(cols, axis=-1).reshape(nb * ho * wo, kh * kw * cin)

    res2d = None
    if residual is not None:
        res2d = residual.reshape(nb * ho * wo, cout)
    y = matmul_fused(patches, layer["w"], layer["scale"], layer["shift"],
                     n=cout, act=act, residual=res2d)
    return y.reshape(nb, ho, wo, cout)


def maxpool_3x3_s2_p1(x):
    # TODO(synk): window max-pool kept as lax.reduce_window (no matmul hot path).
    init = jnp.asarray(-jnp.inf, dtype=x.dtype)
    return lax.reduce_window(x, init, lax.max,
                             window_dimensions=(1, 3, 3, 1),
                             window_strides=(1, 2, 2, 1),
                             padding=((0, 0), (1, 1), (1, 1), (0, 0)))


# ------------------------- parameters -------------------------

def _conv_layer(key, kh, kw, cin, cout):
    """Conv weight pre-reshaped to (K,N), pre-cast bf16, pre-padded to tiles,
    with identity inference-BN (gamma=1, beta=0, mean=0, var=1) folded in."""
    std = (2.0 / (kh * kw * cin)) ** 0.5
    w = jax.random.normal(key, (kh, kw, cin, cout), jnp.float32) * std
    k = kh * kw * cin
    kp, np_ = _rup(k, 128), _rup(cout, 128)
    wmat = _pad2d(w.reshape(k, cout).astype(jnp.bfloat16), kp, np_)
    scale = _pad2d(jnp.ones((1, cout), jnp.float32), 1, np_)
    shift = jnp.zeros((1, np_), jnp.float32)
    return {"w": wmat, "n": cout, "kh": kh, "kw": kw,
            "scale": scale, "shift": shift}


def make_params(key):
    cnt = [0]

    def nxt():
        cnt[0] += 1
        return jax.random.fold_in(key, cnt[0])

    params = {"conv1": _conv_layer(nxt(), 7, 7, 3, 64)}

    stages = []
    in_ch = 64
    for n_blocks, mid, stride in [(3, 64, 1), (4, 128, 2), (6, 256, 2), (3, 512, 2)]:
        blocks = []
        for b in range(n_blocks):
            s = stride if b == 0 else 1
            out_ch = mid * 4
            blk = {
                "w1": _conv_layer(nxt(), 1, 1, in_ch, mid),
                "w2": _conv_layer(nxt(), 3, 3, mid, mid),
                "w3": _conv_layer(nxt(), 1, 1, mid, out_ch),
                "stride": s,
            }
            if b == 0:
                blk["wd"] = _conv_layer(nxt(), 1, 1, in_ch, out_ch)
            blocks.append(blk)
            in_ch = out_ch
        stages.append(blocks)
    params["stages"] = stages

    # fc1: Linear(2048, 512) + ReLU, run through the same fused matmul kernel.
    fc1_w = jax.random.normal(nxt(), (2048, 512), jnp.float32) * (1.0 / 2048 ** 0.5)
    fc1_b = jax.random.normal(nxt(), (512,), jnp.float32) * 0.01
    params["fc1"] = {
        "w": fc1_w.astype(jnp.bfloat16),            # 2048 x 512: already 128-aligned
        "n": 512,
        "scale": jnp.ones((1, 512), jnp.float32),
        "shift": fc1_b.reshape(1, 512),
    }
    # fc2: Linear(512, 1) + Sigmoid kept in plain JAX (too tiny for a pallas_call).
    params["fc2_w"] = jax.random.normal(nxt(), (512, 1), jnp.float32) * (1.0 / 512 ** 0.5)
    params["fc2_b"] = jax.random.normal(nxt(), (1,), jnp.float32) * 0.01
    return params


# ------------------------- model forward -------------------------

def backbone(params, x_nhwc):
    x = conv_bn_act(x_nhwc, params["conv1"], stride=2, pad=3, act="relu")
    x = maxpool_3x3_s2_p1(x)
    for blocks in params["stages"]:
        for blk in blocks:
            s = blk["stride"]
            if "wd" in blk:
                idn = conv_bn_act(x, blk["wd"], s, 0, "none")
            else:
                idn = x
            y = conv_bn_act(x, blk["w1"], 1, 0, "relu")
            y = conv_bn_act(y, blk["w2"], s, 1, "relu")
            # Residual add + ReLU fused into the w3 1x1-conv matmul epilogue.
            x = conv_bn_act(y, blk["w3"], 1, 0, "relu", residual=idn)
    # adaptive average pool to 1x1, flattened (f32 for the head)
    return jnp.mean(x.astype(jnp.float32), axis=(1, 2))  # (N, 2048)


def forward_once(params, x_nhwc):
    feat = backbone(params, x_nhwc)
    fc1 = params["fc1"]
    return matmul_fused(feat, fc1["w"], fc1["scale"], fc1["shift"], n=512,
                        act="relu", out_dtype=jnp.float32)  # (N, 512)


def siamese_forward(params, input1_nchw, input2_nchw):
    b = input1_nchw.shape[0]
    # Branch fusion: weights are shared, so both inputs go through the
    # backbone / fc1 in ONE pass (doubles M, halves launches & weight reads).
    x = jnp.concatenate([input1_nchw, input2_nchw], axis=0)
    x = jnp.transpose(x, (0, 2, 3, 1)).astype(jnp.bfloat16)     # NCHW -> NHWC bf16
    e = forward_once(params, x)                                  # (2B, 512) f32
    e1, e2 = e[:b], e[b:]
    d = jnp.abs(e1 - e2)                                         # (B, 512)
    # fc2 head: (B,512)x(512,1) + exact sigmoid in plain JAX (per perf review:
    # a dedicated pallas_call would pad N 1->128 and M to 16, wasting the MXU).
    return jax.nn.sigmoid(d @ params["fc2_w"] + params["fc2_b"])  # (B, 1)


if __name__ == "__main__":
    key = jax.random.PRNGKey(0)
    k_params, k1, k2 = jax.random.split(key, 3)
    params = make_params(k_params)

    input1 = jax.random.normal(k1, (2, 3, 16, 16), jnp.float32)  # NCHW, like PyTorch
    input2 = jax.random.normal(k2, (2, 3, 16, 16), jnp.float32)

    out = siamese_forward(params, input1, input2)
    out = jax.block_until_ready(out)

    assert out.shape == (2, 1), out.shape
    assert bool(jnp.all(jnp.isfinite(out)))
    assert bool(jnp.all((out >= 0.0) & (out <= 1.0)))  # sigmoid output range
    print("KERNEL_OK")
</pallas_src>

<mosaic_0001>
module attributes {stable_mosaic.version = 11 : i64} {
  func.func @_mm_fused_kernel(%arg0: i32, %arg1: i32, %arg2: i32, %arg3: memref<128x256xbf16, #tpu.memory_space<vmem>>, %arg4: memref<256x128xbf16, #tpu.memory_space<vmem>>, %arg5: memref<1x128xf32, #tpu.memory_space<vmem>>, %arg6: memref<1x128xf32, #tpu.memory_space<vmem>>, %arg7: memref<128x128xbf16, #tpu.memory_space<vmem>>, %arg8: memref<128x128xf32, #tpu.memory_space<vmem>>) attributes {dimension_semantics = [#tpu.dimension_semantics<parallel>, #tpu.dimension_semantics<parallel>, #tpu.dimension_semantics<arbitrary>], iteration_bounds = array<i64: 2, 1, 1>, scalar_prefetch = 0 : i64, scratch_operands = 1 : i64, tpu.core_type = #tpu.core_type<tc>, window_params = [{transform_indices = @transform_0, window_bounds = array<i64: 128, 256>}, {transform_indices = @transform_1, window_bounds = array<i64: 256, 128>}, {transform_indices = @transform_2, window_bounds = array<i64: 1, 128>}, {transform_indices = @transform_3, window_bounds = array<i64: 1, 128>}, {transform_indices = @transform_4, window_bounds = array<i64: 128, 128>}]} {
    %c0_i32 = arith.constant 0 : i32
    %0 = arith.cmpi eq, %arg2, %c0_i32 : i32
    %1 = arith.extui %0 : i1 to i32
    %c0_i32_0 = arith.constant 0 : i32
    %2 = arith.cmpi ne, %1, %c0_i32_0 : i32
    scf.if %2 {
      %cst_10 = arith.constant 0.000000e+00 : f32
      %12 = vector.broadcast %cst_10 : f32 to vector<128x128xf32>
      %c0_11 = arith.constant 0 : index
      %c0_12 = arith.constant 0 : index
      %13 = vector.load %arg8[%c0_11, %c0_12] : memref<128x128xf32, #tpu.memory_space<vmem>>, vector<128x128xf32>
      tpu.vector_store %arg8[%c0_11, %c0_12], %12 {strides = array<i32>} : memref<128x128xf32, #tpu.memory_space<vmem>>, vector<128x128xf32>,
    } else {
    }
    %c0 = arith.constant 0 : index
    %c0_1 = arith.constant 0 : index
    %3 = vector.load %arg8[%c0, %c0_1] : memref<128x128xf32, #tpu.memory_space<vmem>>, vector<128x128xf32>
    %c0_2 = arith.constant 0 : index
    %c0_3 = arith.constant 0 : index
    %4 = vector.load %arg3[%c0_2, %c0_3] : memref<128x256xbf16, #tpu.memory_space<vmem>>, vector<128x256xbf16>
    %c0_4 = arith.constant 0 : index
    %c0_5 = arith.constant 0 : index
    %5 = vector.load %arg4[%c0_4, %c0_5] : memref<256x128xbf16, #tpu.memory_space<vmem>>, vector<256x128xbf16>
    %cst = arith.constant dense<0.000000e+00> : vector<128x128xf32>
    %6 = tpu.matmul %4, %5, %cst {dimension_numbers = #tpu.dot_dimension_numbers<[1], [0], [0], [1], [0, 0, 1, 1], [], []>} : vector<128x256xbf16>, vector<256x128xbf16>, vector<128x128xf32> -> vector<128x128xf32>
    %7 = arith.addf %3, %6 : vector<128x128xf32>
    %c0_6 = arith.constant 0 : index
    %c0_7 = arith.constant 0 : index
    %8 = vector.load %arg8[%c0_6, %c0_7] : memref<128x128xf32, #tpu.memory_space<vmem>>, vector<128x128xf32>
    tpu.vector_store %arg8[%c0_6, %c0_7], %7 {strides = array<i32>} : memref<128x128xf32, #tpu.memory_space<vmem>>, vector<128x128xf32>,
    %c0_i32_8 = arith.constant 0 : i32
    %9 = arith.cmpi eq, %arg2, %c0_i32_8 : i32
    %10 = arith.extui %9 : i1 to i32
    %c0_i32_9 = arith.constant 0 : i32
    %11 = arith.cmpi ne, %10, %c0_i32_9 : i32
    scf.if %11 {
      %c0_10 = arith.constant 0 : index
      %c0_11 = arith.constant 0 : index
      %12 = vector.load %arg8[%c0_10, %c0_11] : memref<128x128xf32, #tpu.memory_space<vmem>>, vector<128x128xf32>
      %c0_12 = arith.constant 0 : index
      %c0_13 = arith.constant 0 : index
      %13 = vector.load %arg5[%c0_12, %c0_13] : memref<1x128xf32, #tpu.memory_space<vmem>>, vector<1x128xf32>
      %14 = vector.broadcast %13 : vector<1x128xf32> to vector<128x128xf32>
      %15 = arith.mulf %12, %14 : vector<128x128xf32>
      %c0_14 = arith.constant 0 : index
      %c0_15 = arith.constant 0 : index
      %16 = vector.load %arg6[%c0_14, %c0_15] : memref<1x128xf32, #tpu.memory_space<vmem>>, vector<1x128xf32>
      %17 = vector.broadcast %16 : vector<1x128xf32> to vector<128x128xf32>
      %18 = arith.addf %15, %17 : vector<128x128xf32>
      %cst_16 = arith.constant 0.000000e+00 : f32
      %19 = vector.broadcast %cst_16 : f32 to vector<128x128xf32>
      %20 = arith.maximumf %18, %19 : vector<128x128xf32>
      %21 = arith.truncf %20 : vector<128x128xf32> to vector<128x128xbf16>
      %c0_17 = arith.constant 0 : index
      %c0_18 = arith.constant 0 : index
      %22 = vector.load %arg7[%c0_17, %c0_18] : memref<128x128xbf16, #tpu.memory_space<vmem>>, vector<128x128xbf16>
      tpu.vector_store %arg7[%c0_17, %c0_18], %21 {strides = array<i32>} : memref<128x128xbf16, #tpu.memory_space<vmem>>, vector<128x128xbf16>,
    } else {
    }
    return
  }
  func.func @transform_0(%arg0: i32, %arg1: i32, %arg2: i32) -> (i32, i32) {
    %c0_i32 = arith.constant 0 : i32
    return %arg0, %arg2 : i32, i32
  }
  func.func @transform_1(%arg0: i32, %arg1: i32, %arg2: i32) -> (i32, i32) {
    %c0_i32 = arith.constant 0 : i32
    return %arg2, %arg1 : i32, i32
  }
  func.func @transform_2(%arg0: i32, %arg1: i32, %arg2: i32) -> (i32, i32) {
    %c0_i32 = arith.constant 0 : i32
    %c0_i32_0 = arith.constant 0 : i32
    return %c0_i32, %arg1 : i32, i32
  }
  func.func @transform_3(%arg0: i32, %arg1: i32, %arg2: i32) -> (i32, i32) {
    %c0_i32 = arith.constant 0 : i32
    %c0_i32_0 = arith.constant 0 : i32
    return %c0_i32, %arg1 : i32, i32
  }
  func.func @transform_4(%arg0: i32, %arg1: i32, %arg2: i32) -> (i32, i32) {
    %c0_i32 = arith.constant 0 : i32
    return %arg0, %arg1 : i32, i32
  }
}

</mosaic_0001>

<bundles_post_ra>
// kernel: tpu_custom_call.1
= control target key start
LH: loop header
LB: loop body
LE: loop exit
PB: predicated region body
PF: predicated region fallthrough
CT: control target
= control target key end

     0   :  { %9 = vsyncpa [#allocation4], 0  ;;  %s1799_s0 = inlined_call_operand.hbm [shape: bf16[256,256], index: 0, kind: input, shape index: {}]   ;;  %s1800_s1 = inlined_call_operand.hbm [shape: bf16[256,128], index: 1, kind: input, shape index: {}]   ;;  %s1801_s2 = inlined_call_operand.vmem [shape: f32[1,128], index: 2, kind: input, shape index: {}]   ;;  %s1802_s3 = inlined_call_operand.vmem [shape: f32[1,128], index: 3, kind: input, shape index: {}]   ;;  %s1803_s4 = inlined_call_operand.hbm [shape: bf16[256,128], index: 4, kind: output, shape index: {}]  }
   0x1   :  { %11 = vsyncpa [#allocation4 + $0x1], 0 }
   0x2   :  { %12 = vsyncpa [#allocation7], 0 }
   0x3   :  { %13 = vsyncpa [#allocation5], 0 }
   0x4   :  { %15 = vsyncpa [#allocation5 + $0x1], 0  ;;  %s1508_s15 = smov 0   ;;  %s1510_s16 = smov 0  }
   0x5   :  { %s1512_s17 = smov 0   ;;  %s1514_s18 = smov 0  }
   0x6   :  { %s1516_s19 = smov 0   ;;  %s1518_s20 = smov 0  }
   0x7 LB: > { %s993_s21 = sadd.s32 4294967295, %s1472_s20   ;;  %s994_s22 = sadd.s32 4294967294, %s1472_s20   ;;  %s1472_s20 = sphi %s1518_s20, %s21_s20   ;;  %s1468_s19 = sphi %s1516_s19, %s1827_s19   ;;  %s1464_s18 = sphi %s1514_s18, %s1826_s18   ;;  %s1460_s17 = sphi %s1512_s17, %s1825_s17   ;;  %s1456_s16 = sphi %s1510_s16, %s1824_s16   ;;  %s1452_s15 = sphi %s1508_s15, %s1823_s15  }
   0x8   : > { %p62_p0 = scmp.ne.s32.totalorder %s1456_s16, %s1452_s15  ;;  %p1542_p1 = scmp.eq.s32.totalorder %s993_s21, 0 }
   0x9   : > { %p1546_p2 = scmp.eq.s32.totalorder %s993_s21, 1  ;;  %p174_p3 = scmp.eq.s32.totalorder %s994_s22, 1 }
   0xa   : > { %s1808_s23 = scalar_select %p1542_p1, 1, 0 }
   0xb   : > { %s1809_s24 = scalar_select %p1546_p2, 1, 0 }
   0xc   : > { %p1552_p4 = por %p1542_p1, %p62_p0  ;;  %p995_p5 = scmp.ge.s32.totalorder %s1472_s20, 1 }
   0xd   : > { %p1557_p6 = por %p174_p3, %p62_p0  ;;  %p181_p7 = scmp.lt.s32.totalorder %s1472_s20, 3 }
   0xe   : > { %s1810_s25 = scalar_select %p1552_p4, 1, 0 }
   0xf   : > { %s1811_s26 = scalar_select %p1557_p6, 1, 0 }
  0x10   : > { %p1562_p8 = pnand %p995_p5, %p181_p7  ;;  %s1474_s28 = smov [#allocation6]  }
  0x11   : > { %s197_s29 = sshll.u32 %s1474_s28, 4  ;;  %s40_s5 = sadd.s32 1, %s1468_s19  ;;  %s198_s29 = int_to_ptr.vmem [resolvable:$true] %s197_s29 }
  0x12   : > { %s1812_s27 = scalar_select %p1562_p8, 1, 0 }
  0x13   : > { %p1217_p9 = pneg %p1562_p8  ;;  %s1328_s8 = scalar_lea.hbm %s1800_s1, 2048 }
  0x14   : > { %p1329_p12 = scmp.ne.s32.totalorder %s1800_s1, %s1328_s8  ;;  %p1335_p5 = scmp.lt.u32.totalorder %s1328_s8, %s1800_s1 }
  0x15   : > { %p1571_p11 = pnand %p1217_p9, %p1542_p1 }
  0x17   : > { %p1330_p13 = pneg %p1571_p11 }
  0x19   : > { %p1331_p0 = pnand %p1330_p13, %p1329_p12 }
  0x1b   : > { %p1332_p3 = pneg %p1331_p0 }
  0x1d   : > { %p1337_p7 = pnand %p1335_p5, %p1332_p3 }
  0x1f   : > { %1340 = shalt.err (!%p1337_p7)
}
  0x20   : > { %s1341_s13 = scalar_lea.vmem %s198_s29, 2048  ;;  %p1349_p1 = scmp.lt.s32.totalorder %s198_s29, %s198_s29 }
  0x21   : > { %p1342_p9 = scmp.ne.s32.totalorder %s198_s29, %s1341_s13  ;;  %p1350_p4 = scmp.lt.s32.totalorder %s1341_s13, %s1341_s13 }
  0x23   : > { %p1344_p10 = pnand %p1342_p9, %p1330_p13  ;;  %p1351_p8 = por %p1350_p4, %p1349_p1 }
  0x25   : > { %p1345_p6 = pneg %p1344_p10 }
  0x27   : > { %p1352_p2 = pnand %p1351_p8, %p1345_p6 }
  0x29   : > { %1355 = shalt.err (!%p1352_p2)
}
  0x2a   : > { %s1475_s14 = smov 64   ;;  %s1476_s21 = smov 4  }
  0x2b   : > { %1220 = dma.hbm_to_vmem [thread:$0]  (!%p1571_p11), %s1800_s1, 2048, %s198_s29, [#allocation7], %s1475_s14, %s1475_s14, %s1476_s21  }
  0x2c   : > { %p42_p1 = scmp.ge.s32.totalorder %s40_s5, 2  ;;  %s49_s6 = sadd.s32 1, %s1460_s17 }
  0x2d   : > { %p56_p2 = scmp.ne.s32.totalorder %s1460_s17, %s1456_s16  ;;  %p57_p4 = scmp.eq.s32.totalorder %s1472_s20, 0 }
  0x2e   : > { %s1829_s5 = smov (%p42_p1, %s40_s5), 0  ;;  %p1815_p8 = scmp.ne.s32.totalorder %s1809_s24, 0 }
  0x2f   : > { %p1598_p6 = por %p57_p4, %p56_p2  ;;  %s44_s30 = ssub.s32 %s1468_s19, %s1829_s5 }
  0x30   : > { %p1604_p10 = por %p1815_p8, %p56_p2  ;;  %p1230_p12 = scmp.lt.s32.totalorder %s1472_s20, 2 }
  0x31   : > { %p47_p11 = scmp.eq.s32.totalorder %s44_s30, 0  ;;  %s223_s29 = sand.u32 1, %s1460_s17  }
  0x32   : > { %s1000_s9 = sshll.u32 %s223_s29, 7  ;;  %s1064_s11 = sshll.u32 %s1468_s19, 11 }
  0x33   : > { %s1613_s10 = scalar_select %p47_p11, %s1460_s17, %s49_s6  }
  0x34   : > { %s1619_s14 = scalar_lea.hbm %s1799_s0, %s1064_s11  ;;  %s227_s24 = scalar_lea.vmem [#allocation3], %s1000_s9 }
  0x35   : > { %s237_s21 = sshll.u32 %s227_s24, 4  ;;  %p1625_p13 = pnand %p1230_p12, %p1598_p6  ;;  %s1621_s21 = int_to_ptr.vmem [resolvable:$true] %s237_s21 }
  0x36   : > { %s1629_s28 = scalar_lea.sflag [#allocation4], %s223_s29  ;;  %s1356_s6 = scalar_lea.hbm %s1619_s14, 2048 }
  0x37   : > { %p1357_p0 = scmp.ne.s32.totalorder %s1619_s14, %s1356_s6  ;;  %p1358_p3 = pneg %p1625_p13 }
  0x38   : > { %s1361_s7 = scalar_lea.hbm %s1799_s0, 4096  ;;  %p1362_p9 = scmp.lt.u32.totalorder %s1619_s14, %s1799_s0 }
  0x39   : > { %p1359_p5 = pnand %p1358_p3, %p1357_p0  ;;  %p1363_p1 = scmp.lt.u32.totalorder %s1361_s7, %s1356_s6 }
  0x3a   : > { %p1365_p4 = scmp.lt.u32.totalorder %s1356_s6, %s1619_s14 }
  0x3b   : > { %p1360_p7 = pneg %p1359_p5  ;;  %p1364_p2 = por %p1363_p1, %p1362_p9 }
  0x3d   : > { %p1366_p6 = por %p1365_p4, %p1364_p2 }
  0x3f   : > { %p1367_p8 = pnand %p1366_p6, %p1360_p7 }
  0x41   : > { %1370 = shalt.err (!%p1367_p8)
}
  0x42   : > { %s1371_s29 = scalar_lea.vmem %s1621_s21, 2048  ;;  %s1477_s13 = smov [#allocation3]  }
  0x43   : > { %p1372_p12 = scmp.ne.s32.totalorder %s1621_s21, %s1371_s29  ;;  %s1376_s24 = sshll.u32 %s1477_s13, 4  ;;  %s1377_s24 = int_to_ptr.vmem [resolvable:$false] %s1376_s24 }
  0x44   : > { %s1378_s30 = scalar_lea.vmem %s1377_s24, 4096  ;;  %p1379_p5 = scmp.lt.s32.totalorder %s1621_s21, %s1377_s24 }
  0x45   : > { %p1374_p11 = pnand %p1372_p12, %p1358_p3  ;;  %p1380_p9 = scmp.lt.s32.totalorder %s1378_s30, %s1371_s29 }
  0x47   : > { %p1375_p0 = pneg %p1374_p11  ;;  %p1381_p1 = por %p1380_p9, %p1379_p5 }
  0x49   : > { %p1382_p2 = pnand %p1381_p1, %p1375_p0 }
  0x4b   : > { %1385 = shalt.err (!%p1382_p2)
}
  0x4c   : > { %s1478_s6 = smov 128   ;;  %s1479_s9 = smov 8  }
  0x4d   : > { %1224 = dma.hbm_to_vmem [thread:$0]  (!%p1625_p13), %s1619_s14, 2048, %s1621_s21, %s1629_s28, %s1478_s6, %s1478_s6, %s1479_s9  }
  0x4e   : > { %p1818_p3 = scmp.ne.s32.totalorder %s1812_s27, 0 }
  0x4f   : > { %s1660_s7 = sand.u32 (!%p1818_p3), 1, %s1456_s16   ;;  %p1819_p7 = scmp.ne.s32.totalorder (!%p1818_p3), %s1810_s25, 0 }
  0x50   : > { %249 = sbr.rel (%p1818_p3) target bundleno = 389 (0x185), region = 36  ;;  %s1005_s11 = sshll.u32 (!%p1818_p3), %s1660_s7, 7 }
  0x51   : > { %s252_s12 = scalar_lea.sflag (!%p1818_p3), [#allocation4], %s1660_s7  ;;  %s1664_s29 = scalar_lea.vmem (!%p1818_p3), [#allocation3], %s1005_s11 }
  0x57   : > { %1439 = dma.done.wait (%p1819_p7), %s252_s12, 2048  }
  0x58   : > { %1441 = vsyncadd (%p1819_p7), %s252_s12, 4294965248  ;;  %p1820_p13 = scmp.ne.s32.totalorder %s1808_s23, 0 }
  0x5a   : > { %1443 = dma.done.wait (%p1820_p13), [#allocation7], 2048  }
  0x5b   : > { %1445 = vsyncadd (%p1820_p13), [#allocation7], 4294965248  ;;  %v1288_v0 = vld [vmem:[#allocation6 + $0x40] sm:$0xff]   ;;  %v1290_v2 = vld [vmem:[#allocation6 + $0x48] sm:$0xff]   ;;  %s1007_s21 = sshll.u32 %s1660_s7, 6  ;;  %s1081_s28 = sshll.u32 %s1464_s18, 10 }
  0x5c   : > { %v1289_v1 = vld [vmem:[#allocation6] sm:$0xff]   ;;  %1129 = vmatprep.subr.bf16.mxu0 %v1288_v0  ;;  %1193 = vmatprep.subr.bf16.mxu1 %v1288_v0  ;;  %v1291_v3 = vld [vmem:[#allocation6 + $0x8] sm:$0xff]   ;;  %v1292_v4 = vld [vmem:[#allocation6 + $0x50] sm:$0xff]   ;;  %s1711_s22 = scalar_lea.vmem [#allocation8], %s1007_s21  ;;  %s1746_s6 = scalar_lea.hbm %s1803_s4, %s1081_s28 }
  0x5d   : > { %1130 = vmatpush3.bf16.msra.mxu0 %v1289_v1  ;;  %1201 = vmatpush3.bf16.msra.mxu1 %v1289_v1  ;;  %v1293_v5 = vld [vmem:[#allocation6 + $0x10] sm:$0xff]   ;;  %v1294_v6 = vld [vmem:[#allocation6 + $0x58] sm:$0xff]   ;;  %v1296_v8 = vld [vmem:[#allocation6 + $0x60] sm:$0xff]   ;;  %s866_s13 = sshll.u32 %s1711_s22, 4  ;;  %s852_s18 = scalar_lea.sflag [#allocation5], %s1660_s7  ;;  %s1748_s13 = int_to_ptr.vmem [resolvable:$true] %s866_s13 }
  0x5e   : > { %1131 = vmatprep.subr.bf16.mxu0 %v1290_v2  ;;  %1194 = vmatprep.subr.bf16.mxu1 %v1290_v2  ;;  %v1295_v7 = vld [vmem:[#allocation6 + $0x18] sm:$0xff]   ;;  %v1297_v9 = vld [vmem:[#allocation6 + $0x20] sm:$0xff]   ;;  %v1298_v10 = vld [vmem:[#allocation6 + $0x68] sm:$0xff]   ;;  %s1386_s9 = scalar_lea.vmem %s1748_s13, 1024  ;;  %s1480_s11 = smov [#allocation8]  }
  0x5f   : > { %v1306_v11 = vld [vmem:[%s1664_s29 + $0x4] ss:$8 sps:$4 sm:$0xff]   ;;  %v1300_v14 = vld [vmem:[#allocation6 + $0x70] sm:$0xff]   ;;  %v1302_v16 = vld [vmem:[#allocation6 + $0x78] sm:$0xff]   ;;  %p1387_p4 = scmp.ne.s32.totalorder %s1748_s13, %s1386_s9  ;;  %s1390_s12 = sshll.u32 %s1480_s11, 4  ;;  %s1391_s12 = int_to_ptr.vmem [resolvable:$false] %s1390_s12 }
  0x60   : > { %v1309_v12 = vld [vmem:[%s1664_s29 + $0x44] ss:$8 sps:$4 sm:$0xff]   ;;  %593 = vmatprep.mubr.bf16.mxu0 %v1306_v11  ;;  %v1301_v15 = vld [vmem:[#allocation6 + $0x30] sm:$0xff]   ;;  %v1303_v17 = vld [vmem:[#allocation6 + $0x38] sm:$0xff]   ;;  %p1393_p12 = scmp.lt.s32.totalorder %s1748_s13, %s1391_s12 }
  0x61   : > { %1132 = vmatpush3.bf16.msra.mxu0 %v1291_v3  ;;  %1202 = vmatpush3.bf16.msra.mxu1 %v1291_v3  ;;  %v1299_v13 = vld [vmem:[#allocation6 + $0x28] sm:$0xff]   ;;  %v1310_v20 = vld [vmem:[%s1664_s29 + $0x14] ss:$8 sps:$4 sm:$0xff]   ;;  %v1314_v22 = vld [vmem:[%s1664_s29 + $0x10] ss:$8 sps:$4 sm:$0xff]   ;;  %p1388_p6 = pnand %p1387_p4, %p1604_p10 }
  0x62   : > { %1133 = vmatprep.subr.bf16.mxu0 %v1292_v4  ;;  %1195 = vmatprep.subr.bf16.mxu1 %v1292_v4  ;;  %v1304_v18 = vld [vmem:[%s1664_s29] ss:$8 sps:$4 sm:$0xff]   ;;  %v1312_v21 = vld [vmem:[%s1664_s29 + $0x54] ss:$8 sps:$4 sm:$0xff]   ;;  %v1315_v23 = vld [vmem:[%s1664_s29 + $0x50] ss:$8 sps:$4 sm:$0xff]  }
  0x63   : > { %625 = vmatprep.mubr.bf16.mxu1 %v1309_v12  ;;  %v1307_v19 = vld [vmem:[%s1664_s29 + $0x40] ss:$8 sps:$4 sm:$0xff]   ;;  %v1316_v24 = vld [vmem:[%s1664_s29 + $0x24] ss:$8 sps:$4 sm:$0xff]   ;;  %v1322_v28 = vld [vmem:[%s1664_s29 + $0x34] ss:$8 sps:$4 sm:$0xff]   ;;  %p1389_p8 = pneg %p1388_p6 }
  0x64   : > { %v1318_v25 = vld [vmem:[%s1664_s29 + $0x64] ss:$8 sps:$4 sm:$0xff]   ;;  %v1320_v26 = vld [vmem:[%s1664_s29 + $0x20] ss:$8 sps:$4 sm:$0xff]   ;;  %v1324_v29 = vld [vmem:[%s1664_s29 + $0x74] ss:$8 sps:$4 sm:$0xff]  }
  0x65   : > { %1134 = vmatpush3.bf16.msra.mxu0 %v1293_v5  ;;  %1203 = vmatpush3.bf16.msra.mxu1 %v1293_v5  ;;  %v1321_v27 = vld [vmem:[%s1664_s29 + $0x60] ss:$8 sps:$4 sm:$0xff]   ;;  %v1326_v30 = vld [vmem:[%s1664_s29 + $0x30] ss:$8 sps:$4 sm:$0xff]  }
  0x66   : > { %1135 = vmatprep.subr.bf16.mxu0 %v1294_v6  ;;  %1196 = vmatprep.subr.bf16.mxu1 %v1294_v6  ;;  %v1327_v31 = vld [vmem:[%s1664_s29 + $0x70] ss:$8 sps:$4 sm:$0xff]   ;;  %v1693_v35 = vld [vmem:[%s1801_s2] ss:$0 sm:$0xff]  ;;  %s1392_s29 = scalar_lea.vmem %s1391_s12, 2048 }
  0x67   : > { %v1698_v41 = vld [vmem:[%s1802_s3] ss:$0 sm:$0xff]  ;;  %p1394_p11 = scmp.lt.s32.totalorder %s1392_s29, %s1386_s9 }
  0x69   : > { %1136 = vmatpush3.bf16.msra.mxu0 %v1295_v7  ;;  %1204 = vmatpush3.bf16.msra.mxu1 %v1295_v7  ;;  %p1395_p0 = por %p1394_p11, %p1393_p12 }
  0x6a   : > { %1137 = vmatprep.subr.bf16.mxu0 %v1296_v8  ;;  %1197 = vmatprep.subr.bf16.mxu1 %v1296_v8 }
  0x6b   : > { %p1396_p5 = pnand %p1395_p0, %p1389_p8 }
  0x6d   : > { %1138 = vmatpush3.bf16.msra.mxu0 %v1297_v9  ;;  %1205 = vmatpush3.bf16.msra.mxu1 %v1297_v9 }
  0x6e   : > { %1139 = vmatprep.subr.bf16.mxu0 %v1298_v10  ;;  %1198 = vmatprep.subr.bf16.mxu1 %v1298_v10 }
  0x71   : > { %1140 = vmatpush3.bf16.msra.mxu0 %v1299_v13  ;;  %1206 = vmatpush3.bf16.msra.mxu1 %v1299_v13 }
  0x72   : > { %1141 = vmatprep.subr.bf16.mxu0 %v1300_v14  ;;  %1199 = vmatprep.subr.bf16.mxu1 %v1300_v14 }
  0x75   : > { %1142 = vmatpush3.bf16.msra.mxu0 %v1301_v15  ;;  %1207 = vmatpush3.bf16.msra.mxu1 %v1301_v15 }
  0x76   : > { %1143 = vmatprep.subr.bf16.mxu0 %v1302_v16  ;;  %1200 = vmatprep.subr.bf16.mxu1 %v1302_v16 }
  0x79   : > { %1144 = vmatpush3.bf16.msra.mxu0 %v1303_v17  ;;  %1208 = vmatpush3.bf16.msra.mxu1 %v1303_v17 }
  0x7c   : > { %594 = vmatmul.mubr.bf16.vlgmr.msra.gmra.mrb[0].mxu0 %v1304_v18  ;;  %626 = vmatmul.mubr.bf16.vlgmr.msra.gmra.mrb[0].mxu1 %v1307_v19 }
  0x7d   : > { %601 = vmatprep.mubr.bf16.mxu0 %v1310_v20  ;;  %633 = vmatprep.mubr.bf16.mxu1 %v1312_v21 }
  0x84   : > { %602 = vmatmul.mubr.bf16.gmra.mrb[4].mxu0 %v1314_v22  ;;  %634 = vmatmul.mubr.bf16.gmra.mrb[4].mxu1 %v1315_v23 }
  0x85   : > { %609 = vmatprep.mubr.bf16.mxu0 %v1316_v24  ;;  %641 = vmatprep.mubr.bf16.mxu1 %v1318_v25 }
  0x8c   : > { %610 = vmatmul.mubr.bf16.gmra.mrb[8].mxu0 %v1320_v26  ;;  %642 = vmatmul.mubr.bf16.gmra.mrb[8].mxu1 %v1321_v27 }
  0x8d   : > { %617 = vmatprep.mubr.bf16.mxu0 %v1322_v28  ;;  %649 = vmatprep.mubr.bf16.mxu1 %v1324_v29 }
  0x94   : > { %618 = vmatmul.mubr.bf16.gmra.mrb[12].mxu0 %v1326_v30  ;;  %650 = vmatmul.mubr.bf16.gmra.mrb[12].mxu1 %v1327_v31 }
 0x14f   : > { %v1145_v32 = vpop.f32.mrb[0].mxu0  ;;  %v1169_v33 = vpop.f32.mrb[0].mxu1 }
 0x150   : > { %v1146_v34 = vpop.f32.mrb[1].mxu0  ;;  %v1170_v36 = vpop.f32.mrb[1].mxu1 }
 0x151   : > { %v1147_v37 = vadd.f32 %v1146_v34, %v1145_v32  ;;  %v1171_v38 = vadd.f32 %v1170_v36, %v1169_v33  ;;  %v1148_v39 = vpop.f32.mrb[2].mxu0  ;;  %v1172_v40 = vpop.f32.mrb[2].mxu1 }
 0x152   : > { %v1149_v42 = vpop.f32.mrb[3].mxu0  ;;  %v1173_v43 = vpop.f32.mrb[3].mxu1 }
 0x153   : > { %v716_v44 = vmul.f32 %v1147_v37, %v1693_v35  ;;  %v724_v45 = vmul.f32 %v1171_v38, %v1693_v35  ;;  %v1150_v46 = vadd.f32 %v1149_v42, %v1148_v39  ;;  %v1174_v47 = vadd.f32 %v1173_v43, %v1172_v40 }
 0x155   : > { %v739_v48 = vadd.f32 %v1698_v41, %v716_v44  ;;  %v747_v49 = vadd.f32 %v1698_v41, %v724_v45  ;;  %v717_v50 = vmul.f32 %v1150_v46, %v1693_v35  ;;  %v725_v51 = vmul.f32 %v1174_v47, %v1693_v35 }
 0x157   : > { %v740_v52 = vadd.f32 %v1698_v41, %v717_v50  ;;  %v748_v53 = vadd.f32 %v1698_v41, %v725_v51  ;;  %v1151_v54 = vpop.f32.mrb[4].mxu0  ;;  %v1175_v55 = vpop.f32.mrb[4].mxu1  ;;  %v755_v56 = vmax.f32 %v739_v48, 0.0  ;;  %v763_v57 = vmax.f32 %v747_v49, 0.0 }
 0x158   : > { %v1152_v58 = vpop.f32.mrb[5].mxu0  ;;  %v1176_v59 = vpop.f32.mrb[5].mxu1 }
 0x159   : > { %v756_v60 = vmax.f32 %v740_v52, 0.0  ;;  %v764_v61 = vmax.f32 %v748_v53, 0.0  ;;  %v1153_v62 = vadd.f32 %v1152_v58, %v1151_v54  ;;  %v1177_v63 = vadd.f32 %v1176_v59, %v1175_v55  ;;  %v1154_v0 = vpop.f32.mrb[6].mxu0  ;;  %v1178_v1 = vpop.f32.mrb[6].mxu1 }
 0x15a   : > { %v1155_v2 = vpop.f32.mrb[7].mxu0  ;;  %v1179_v3 = vpop.f32.mrb[7].mxu1 }
 0x15b   : > { %v1085_v4 = vpack.c.bf16 %v756_v60, %v755_v56  ;;  %v1105_v5 = vpack.c.bf16 %v764_v61, %v763_v57  ;;  %v718_v6 = vmul.f32 %v1153_v62, %v1693_v35  ;;  %v726_v7 = vmul.f32 %v1177_v63, %v1693_v35 }
 0x15c   : > { %v1156_v8 = vadd.f32 %v1155_v2, %v1154_v0  ;;  %v1180_v9 = vadd.f32 %v1179_v3, %v1178_v1 }
 0x15d   : > { %1086 = vst [vmem:[%s1711_s22] sm:$0xff] %v1085_v4   ;;  %1125 = vst [vmem:[%s1711_s22 + $0x20] sm:$0xff] %v1105_v5   ;;  %v741_v10 = vadd.f32 %v1698_v41, %v718_v6  ;;  %v749_v11 = vadd.f32 %v1698_v41, %v726_v7 }
 0x15e   : > { %v719_v12 = vmul.f32 %v1156_v8, %v1693_v35  ;;  %v727_v13 = vmul.f32 %v1180_v9, %v1693_v35 }
 0x15f   : > { %v1157_v14 = vpop.f32.mrb[8].mxu0  ;;  %v1181_v15 = vpop.f32.mrb[8].mxu1  ;;  %v757_v24 = vmax.f32 %v741_v10, 0.0  ;;  %v765_v25 = vmax.f32 %v749_v11, 0.0 }
 0x160   : > { %v742_v16 = vadd.f32 %v1698_v41, %v719_v12  ;;  %v750_v17 = vadd.f32 %v1698_v41, %v727_v13  ;;  %v1158_v18 = vpop.f32.mrb[9].mxu0  ;;  %v1182_v19 = vpop.f32.mrb[9].mxu1 }
 0x161   : > { %v1159_v20 = vadd.f32 %v1158_v18, %v1157_v14  ;;  %v1183_v21 = vadd.f32 %v1182_v19, %v1181_v15  ;;  %v1160_v22 = vpop.f32.mrb[10].mxu0  ;;  %v1184_v23 = vpop.f32.mrb[10].mxu1 }
 0x162   : > { %v758_v26 = vmax.f32 %v742_v16, 0.0  ;;  %v766_v27 = vmax.f32 %v750_v17, 0.0  ;;  %v1161_v28 = vpop.f32.mrb[11].mxu0  ;;  %v1185_v29 = vpop.f32.mrb[11].mxu1 }
 0x163   : > { %v720_v30 = vmul.f32 %v1159_v20, %v1693_v35  ;;  %v728_v31 = vmul.f32 %v1183_v21, %v1693_v35  ;;  %v1162_v32 = vadd.f32 %v1161_v28, %v1160_v22  ;;  %v1186_v33 = vadd.f32 %v1185_v29, %v1184_v23 }
 0x164   : > { %v1090_v34 = vpack.c.bf16 %v758_v26, %v757_v24  ;;  %v1110_v36 = vpack.c.bf16 %v766_v27, %v765_v25 }
 0x165   : > { %v743_v37 = vadd.f32 %v1698_v41, %v720_v30  ;;  %v751_v38 = vadd.f32 %v1698_v41, %v728_v31  ;;  %v721_v39 = vmul.f32 %v1162_v32, %v1693_v35  ;;  %v729_v40 = vmul.f32 %v1186_v33, %v1693_v35 }
 0x166   : > { %1122 = vst [vmem:[%s1711_s22 + $0x8] sm:$0xff] %v1090_v34   ;;  %1126 = vst [vmem:[%s1711_s22 + $0x28] sm:$0xff] %v1110_v36  }
 0x167   : > { %v744_v42 = vadd.f32 %v1698_v41, %v721_v39  ;;  %v752_v43 = vadd.f32 %v1698_v41, %v729_v40  ;;  %v1163_v44 = vpop.f32.mrb[12].mxu0  ;;  %v1187_v45 = vpop.f32.mrb[12].mxu1  ;;  %v759_v46 = vmax.f32 %v743_v37, 0.0  ;;  %v767_v47 = vmax.f32 %v751_v38, 0.0 }
 0x168   : > { %v1164_v48 = vpop.f32.mrb[13].mxu0  ;;  %v1188_v49 = vpop.f32.mrb[13].mxu1 }
 0x169   : > { %v760_v50 = vmax.f32 %v744_v42, 0.0  ;;  %v768_v51 = vmax.f32 %v752_v43, 0.0  ;;  %v1165_v52 = vadd.f32 %v1164_v48, %v1163_v44  ;;  %v1189_v53 = vadd.f32 %v1188_v49, %v1187_v45  ;;  %v1166_v54 = vpop.f32.mrb[14].mxu0  ;;  %v1190_v55 = vpop.f32.mrb[14].mxu1 }
 0x16a   : > { %v1167_v56 = vpop.f32.mrb[15].mxu0  ;;  %v1191_v57 = vpop.f32.mrb[15].mxu1 }
 0x16b   : > { %v1095_v58 = vpack.c.bf16 %v760_v50, %v759_v46  ;;  %v1115_v59 = vpack.c.bf16 %v768_v51, %v767_v47  ;;  %v722_v60 = vmul.f32 %v1165_v52, %v1693_v35  ;;  %v730_v61 = vmul.f32 %v1189_v53, %v1693_v35 }
 0x16c   : > { %v1168_v62 = vadd.f32 %v1167_v56, %v1166_v54  ;;  %v1192_v63 = vadd.f32 %v1191_v57, %v1190_v55 }
 0x16d   : > { %1123 = vst [vmem:[%s1711_s22 + $0x10] sm:$0xff] %v1095_v58   ;;  %1127 = vst [vmem:[%s1711_s22 + $0x30] sm:$0xff] %v1115_v59   ;;  %v745_v0 = vadd.f32 %v1698_v41, %v722_v60  ;;  %v753_v1 = vadd.f32 %v1698_v41, %v730_v61 }
 0x16e   : > { %v723_v2 = vmul.f32 %v1168_v62, %v1693_v35  ;;  %v731_v3 = vmul.f32 %v1192_v63, %v1693_v35 }
 0x16f   : > { %v761_v6 = vmax.f32 %v745_v0, 0.0  ;;  %v769_v7 = vmax.f32 %v753_v1, 0.0 }
 0x170   : > { %v746_v4 = vadd.f32 %v1698_v41, %v723_v2  ;;  %v754_v5 = vadd.f32 %v1698_v41, %v731_v3 }
 0x172   : > { %v762_v8 = vmax.f32 %v746_v4, 0.0  ;;  %v770_v9 = vmax.f32 %v754_v5, 0.0 }
 0x174   : > { %v1100_v35 = vpack.c.bf16 %v762_v8, %v761_v6  ;;  %v1120_v10 = vpack.c.bf16 %v770_v9, %v769_v7 }
 0x176   : > { %1124 = vst [vmem:[%s1711_s22 + $0x18] sm:$0xff] %v1100_v35   ;;  %1128 = vst [vmem:[%s1711_s22 + $0x38] sm:$0xff] %v1120_v10  }
 0x177   : > { %1399 = shalt.err (!%p1396_p5)
}
 0x178   : > { %s1400_s23 = scalar_lea.hbm %s1746_s6, 1024  ;;  %s1404_s14 = scalar_lea.hbm %s1803_s4, 2048 }
 0x179   : > { %p1401_p9 = scmp.ne.s32.totalorder %s1746_s6, %s1400_s23  ;;  %p1405_p3 = scmp.lt.u32.totalorder %s1746_s6, %s1803_s4 }
 0x17a   : > { %p1406_p7 = scmp.lt.u32.totalorder %s1404_s14, %s1400_s23  ;;  %p1408_p4 = scmp.lt.u32.totalorder %s1400_s23, %s1746_s6 }
 0x17b   : > { %p1402_p1 = pnand %p1401_p9, %p1604_p10 }
 0x17c   : > { %p1407_p13 = por %p1406_p7, %p1405_p3 }
 0x17d   : > { %p1403_p2 = pneg %p1402_p1 }
 0x17e   : > { %p1409_p6 = por %p1408_p4, %p1407_p13 }
 0x180   : > { %p1410_p8 = pnand %p1409_p6, %p1403_p2 }
 0x182   : > { %1413 = shalt.err (!%p1410_p8)
}
 0x183   : > { %s1481_s28 = smov 64   ;;  %s1482_s24 = smov 4  }
 0x184   : > { %1215 = dma.vmem_to_hbm [thread:$0]  (%p1604_p10), %s1748_s13, 1024, %s1746_s6, %s852_s18, %s1481_s28, %s1481_s28, %s1482_s24  }
 0x185 PF: > { %s881_s30 = sand.u32 1, %s1452_s15   ;;  %p1821_p12 = scmp.ne.s32.totalorder %s1811_s26, 0 }
 0x186   : > { %p1822_p11 = scmp.ge.s32.totalorder %s1472_s20, 2  ;;  %s882_s9 = scalar_lea.sflag [#allocation5], %s881_s30 }
 0x188   : > { %p1226_p0 = pnand %p1822_p11, %p1821_p12 }
 0x18a   : > { %1447 = dma.done.wait (!%p1226_p0), %s882_s9, 1024  }
 0x18b   : > { %1449 = vsyncadd (!%p1226_p0), %s882_s9, 4294966272  ;;  %s21_s20 = sadd.s32 1, %s1472_s20   ;;  %s1823_s15 = smov %s1456_s16 }
 0x18c   : > { %p18_p5 = scmp.ge.s32.totalorder %s21_s20, 4   ;;  %s1824_s16 = smov %s1460_s17 }
 0x18d   : > { %s1825_s17 = smov %s1613_s10  ;;  %s1826_s18 = smov %s1468_s19 }
 0x18e   : > { %s1827_s19 = smov %s1829_s5  ;;  %20 = sbr.rel (!%p18_p5) target bundleno = 7 (0x7), region = 100 }
 0x195   :  { %887 = vsyncpa [#allocation4], 1 }
 0x196   :  { %889 = vsyncpa [#allocation4 + $0x1], 1 }
 0x197   :  { %890 = vsyncpa [#allocation7], 1 }
 0x198   :  { %891 = vsyncpa [#allocation5], 1 }
 0x199   :  { %893 = vsyncpa [#allocation5 + $0x1], 1 }

</bundles_post_ra>
